<compile_context>
chip_gen: v6e
topology: v6e:2x2x1
jax: 0.10.0
libtpu: 0.0.40
codegen_flags: <defaults>
</compile_context>

<pallas_src>
import jax
import jax.numpy as jnp
from jax.experimental import pallas as pl
from jax.experimental.pallas import tpu as pltpu

F32 = jnp.float32
BF16 = jnp.bfloat16
VMEM = pltpu.MemorySpace.VMEM


# ------------------------------ fused forward kernel ------------------------------

def make_kernel(L_in, latent, off):
    """Build the fused kernel; `off` maps bias name -> static lane offset in the packed
    bias buffer (all offsets are multiples of 128, so slices stay lane-aligned)."""
    L4, L8 = 4 * L_in, 8 * L_in

    def kernel(sh_ref, ha_ref, gbemb_ref,
               me1, me2, me3, wpool, wa1, wgb_a, wfc, md1, md2, md3,
               bias_ref, out_ref):
        def mxu(a, w):
            # bf16 operands, f32 accumulation on the MXU
            return jnp.dot(a.astype(BF16), w[...], preferred_element_type=F32)

        def bias(name, width):
            o = off[name]
            return bias_ref[:, o:o + width]

        relu = lambda v: jnp.maximum(v, 0.0)

        # --- EncoderConv: Conv1d(1->4)->ReLU->Conv1d(4->8)->ReLU->Conv1d(8->4)->ReLU ---
        # convs act as banded matmuls on the channel-major packed (B, C*L) layout.
        h = relu(mxu(sh_ref[...], me1) + bias('be1', L4))           # (B, 4L)
        h = relu(mxu(h, me2) + bias('be2', L8))                     # (B, 8L)
        h = relu(mxu(h, me3) + bias('be3', L4))                     # (B, 4L)
        # mean over L fused with latent_proj into one (4L, latent) matmul
        z = mxu(h, wpool) + bias('blat', latent)                    # (B, latent)

        # --- conditioning: anthro MLP (anth2 folded into FiLM), embeddings pre-gathered ---
        a = relu(mxu(ha_ref[...], wa1) + bias('ba1', 12))           # (B, 12)
        gb = mxu(a, wgb_a) + gbemb_ref[...] + bias('bgb', 2 * latent)  # (B, 2*latent)
        z = z * gb[:, :latent] + gb[:, latent:]                     # FiLM; split at lane 128

        # --- DecoderConv: fc -> Conv1d(4->8)->ReLU->Conv1d(8->4)->ReLU->Conv1d(4->1) ---
        hd = mxu(z, wfc) + bias('bfc', 256)                         # (B, 256) == view(B,4,64)
        hd = relu(mxu(hd, md1) + bias('bd1', 512))                  # (B, 512)
        hd = relu(mxu(hd, md2) + bias('bd2', 256))                  # (B, 256)
        out_ref[...] = mxu(hd, md3) + bias('bd3', 64)               # (B, 64) == squeeze(1)

    return kernel


# ---------------------- host-side (one-time) parameter folding ----------------------

def _conv1d_as_banded(w, L):
    """PyTorch Conv1d weight (cout, cin, 3), padding=1 -> dense (cin*L, cout*L) matrix so
    packed_out = packed_in @ M on the channel-major packed layout packed[:, c*L+l]==x[:,c,l]."""
    cout, cin, _ = w.shape
    idx = jnp.arange(L)
    tap = idx[:, None] - idx[None, :] + 1                      # t such that l == m + t - 1
    valid = (tap >= 0) & (tap <= 2)
    wt = jnp.transpose(w, (1, 0, 2))                           # (cin, cout, 3)
    g = wt[:, :, jnp.clip(tap, 0, 2)]                          # (cin, cout, L, L)
    g = jnp.where(valid[None, None], g, 0.0)
    return jnp.transpose(g, (0, 2, 1, 3)).reshape(cin * L, cout * L)


def _conv1d_bias_packed(b, L):
    return jnp.repeat(b, L)[None, :]                           # (1, cout*L)


def init_params(key, num_freq_bins=16, latent_dim=128, head_dim=13, ear_dim=12):
    """Deterministic synthetic params, PyTorch-style (Linear W stored (in,out),
    Conv1d W stored (cout, cin, 3))."""
    ks = iter(jax.random.split(key, 16))

    def lin(k, din, dout):
        kw, kb = jax.random.split(k)
        bound = 1.0 / (din ** 0.5)
        return (jax.random.uniform(kw, (din, dout), F32, -bound, bound),
                jax.random.uniform(kb, (1, dout), F32, -bound, bound))

    def conv(k, cout, cin, ksz=3):
        kw, kb = jax.random.split(k)
        bound = 1.0 / ((cin * ksz) ** 0.5)
        return (jax.random.uniform(kw, (cout, cin, ksz), F32, -bound, bound),
                jax.random.uniform(kb, (cout,), F32, -bound, bound))

    anthro_dim = head_dim + ear_dim
    p = {}
    p['enc1'] = conv(next(ks), 4, 1)
    p['enc2'] = conv(next(ks), 8, 4)
    p['enc3'] = conv(next(ks), 4, 8)
    p['latent'] = lin(next(ks), 4, latent_dim)
    p['anth1'] = lin(next(ks), anthro_dim, 12)
    p['anth2'] = lin(next(ks), 12, 12)
    p['freq_emb'] = jax.random.normal(next(ks), (num_freq_bins, 10), F32)
    p['dom_emb'] = jax.random.normal(next(ks), (4, 4), F32)
    cond_dim = 12 + 10 + 4
    p['gamma'] = lin(next(ks), cond_dim, latent_dim)
    p['beta'] = lin(next(ks), cond_dim, latent_dim)
    p['dec_fc'] = lin(next(ks), latent_dim, 4 * 64)
    p['dec1'] = conv(next(ks), 8, 4)
    p['dec2'] = conv(next(ks), 4, 8)
    p['dec3'] = conv(next(ks), 1, 4)
    return p


def prepare_params(p, L_in):
    """Fold PyTorch params into the fused-kernel operands (once, outside the forward)."""
    L_dec = 64
    latent = p['latent'][0].shape[1]
    q = {'L_in': L_in, 'latent': latent}

    # encoder convs -> banded matrices (bf16)
    q['me1'] = _conv1d_as_banded(p['enc1'][0], L_in).astype(BF16)
    q['me2'] = _conv1d_as_banded(p['enc2'][0], L_in).astype(BF16)
    q['me3'] = _conv1d_as_banded(p['enc3'][0], L_in).astype(BF16)
    # mean over L followed by latent_proj == one (4L, latent) matmul
    q['wpool'] = (jnp.repeat(p['latent'][0], L_in, axis=0) / float(L_in)).astype(BF16)
    # anthro MLP layer 1 (head/ear are concatenated in the wrapper)
    q['wa1'] = p['anth1'][0].astype(BF16)

    # FiLM: fuse gamma|beta into one 2*latent-wide weight, fold anth2 and embedding tables in
    wgb = jnp.concatenate([p['gamma'][0], p['beta'][0]], axis=1)    # (26, 2*latent)
    bgb = jnp.concatenate([p['gamma'][1], p['beta'][1]], axis=1)    # (1, 2*latent)
    wa2, ba2 = p['anth2']
    q['wgb_a'] = (wa2 @ wgb[:12]).astype(BF16)                      # anth2 folded in
    bgb = bgb + ba2 @ wgb[:12]                                      # anth2 bias folded in
    q['wgb_f'] = p['freq_emb'] @ wgb[12:22]                         # (nf, 2*latent), f32
    q['wgb_d'] = p['dom_emb'] @ wgb[22:26]                          # (4, 2*latent), f32

    # decoder
    q['wfc'] = p['dec_fc'][0].astype(BF16)
    q['md1'] = _conv1d_as_banded(p['dec1'][0], L_dec).astype(BF16)
    q['md2'] = _conv1d_as_banded(p['dec2'][0], L_dec).astype(BF16)
    q['md3'] = _conv1d_as_banded(p['dec3'][0], L_dec).astype(BF16)

    # pack all 10 small bias vectors into ONE f32 buffer (each segment 128-lane aligned)
    segs = [('be1', _conv1d_bias_packed(p['enc1'][1], L_in)),
            ('be2', _conv1d_bias_packed(p['enc2'][1], L_in)),
            ('be3', _conv1d_bias_packed(p['enc3'][1], L_in)),
            ('blat', p['latent'][1]),
            ('ba1', p['anth1'][1]),
            ('bgb', bgb),
            ('bfc', p['dec_fc'][1]),
            ('bd1', _conv1d_bias_packed(p['dec1'][1], L_dec)),
            ('bd2', _conv1d_bias_packed(p['dec2'][1], L_dec)),
            ('bd3', _conv1d_bias_packed(p['dec3'][1], L_dec))]
    off, chunks, offsets = 0, [], {}
    for name, v in segs:
        v = jnp.asarray(v, F32).reshape(1, -1)
        offsets[name] = off
        pad = (-v.shape[1]) % 128
        chunks.append(jnp.pad(v, ((0, 0), (0, pad))))
        off += v.shape[1] + pad
    q['bias'] = jnp.concatenate(chunks, axis=1)
    q['bias_off'] = offsets
    return q


# ------------------------------------ wrapper ------------------------------------

def conv_hyper_cnn_forward(q, sh_input, head_anthro, ear_anthro, freq_idx, domain_idx,
                           batch_tile=None):
    B = sh_input.shape[0]
    L_in, latent = q['L_in'], q['latent']

    # index handling as in the PyTorch module
    fidx = freq_idx
    if fidx.ndim > 1:
        fidx = fidx[..., 0]                    # squeeze(-1)
    fidx = fidx.astype(jnp.int32)
    didx = domain_idx
    if didx.ndim > 1:
        didx = jnp.argmax(didx, axis=1)        # one-hot -> index
    didx = didx.astype(jnp.int32)

    # pre-gather FiLM-folded embedding rows in XLA (cheap), add inside the kernel
    gb_emb = q['wgb_f'][fidx] + q['wgb_d'][didx]                         # (B, 2*latent) f32
    sh = sh_input.astype(BF16)
    ha = jnp.concatenate([head_anthro, ear_anthro], axis=1).astype(BF16)  # (B, 25)

    kernel = make_kernel(L_in, latent, q['bias_off'])
    args = (sh, ha, gb_emb,
            q['me1'], q['me2'], q['me3'], q['wpool'], q['wa1'], q['wgb_a'],
            q['wfc'], q['md1'], q['md2'], q['md3'], q['bias'])
    out_shape = jax.ShapeDtypeStruct((B, 64), F32)

    if batch_tile is not None and B % batch_tile == 0:
        # batched path: shard the batch over a parallel grid; weights stay resident
        # (constant block index) so they are DMA'd once.
        TB = batch_tile

        def bspec(x):        # batch-sharded operand
            return pl.BlockSpec((TB, x.shape[1]), lambda i: (i, 0))

        def wspec(x):        # weight / packed-bias: full array, constant block index
            return pl.BlockSpec(x.shape, lambda i: (0, 0))

        in_specs = [bspec(sh), bspec(ha), bspec(gb_emb)] + [wspec(w) for w in args[3:]]
        # TODO(synk): on v7x, size TB against 64 MiB VMEM (not 128) once TB reaches
        # thousands of rows, and consider per-tap roll-based convs if MXU-bound.
        return pl.pallas_call(
            kernel,
            out_shape=out_shape,
            grid=(B // TB,),
            in_specs=in_specs,
            out_specs=pl.BlockSpec((TB, 64), lambda i: (i, 0)),
            compiler_params=pltpu.CompilerParams(dimension_semantics=("parallel",)),
        )(*args)

    # small-batch path: single grid-less invocation (latency-bound)
    vspec = pl.BlockSpec(memory_space=VMEM)
    return pl.pallas_call(
        kernel,
        out_shape=out_shape,
        in_specs=[vspec] * len(args),
        out_specs=vspec,
    )(*args)


# --------------------------- pure-JAX reference (spec) ---------------------------

def _conv1d_ref(x, w, b):
    xp = jnp.pad(x, ((0, 0), (0, 0), (1, 1)))
    cols = jnp.stack([xp[:, :, t:t + x.shape[2]] for t in range(3)], axis=-1)  # (B,cin,L,3)
    return jnp.einsum('bclt,oct->bol', cols, w) + b[None, :, None]


def reference_forward(p, sh, head, ear, fidx, didx):
    relu = jax.nn.relu
    h = sh[:, None, :]
    h = relu(_conv1d_ref(h, *p['enc1']))
    h = relu(_conv1d_ref(h, *p['enc2']))
    h = relu(_conv1d_ref(h, *p['enc3']))
    z = h.mean(axis=2) @ p['latent'][0] + p['latent'][1]
    a = relu(jnp.concatenate([head, ear], axis=1) @ p['anth1'][0] + p['anth1'][1])
    a = a @ p['anth2'][0] + p['anth2'][1]
    cond = jnp.concatenate([a, p['freq_emb'][fidx], p['dom_emb'][didx]], axis=1)
    gamma = cond @ p['gamma'][0] + p['gamma'][1]
    beta = cond @ p['beta'][0] + p['beta'][1]
    z = z * gamma + beta
    hd = (z @ p['dec_fc'][0] + p['dec_fc'][1]).reshape(z.shape[0], 4, 64)
    hd = relu(_conv1d_ref(hd, *p['dec1']))
    hd = relu(_conv1d_ref(hd, *p['dec2']))
    hd = _conv1d_ref(hd, *p['dec3'])
    return hd[:, 0, :]


def _check(out, ref):
    err = float(jnp.max(jnp.abs(out - ref)))
    tol = 5e-3 + 3e-2 * float(jnp.max(jnp.abs(ref)))   # bf16-weight path: ~3% rel budget
    assert err < tol, f"kernel/reference mismatch: {err} (tol {tol})"


if __name__ == "__main__":
    key = jax.random.PRNGKey(0)
    kp, kx, kh, ke, kf, kd = jax.random.split(key, 6)

    B, L = 2, 16
    num_freq_bins, latent_dim = 16, 128
    head_dim, ear_dim = 13, 12            # 13 + 12 = anthro_input_dim = 25

    raw = init_params(kp, num_freq_bins=num_freq_bins, latent_dim=latent_dim,
                      head_dim=head_dim, ear_dim=ear_dim)
    params = prepare_params(raw, L_in=L)

    sh_input = jax.random.normal(kx, (B, L), F32)
    head_anthro = jax.random.normal(kh, (B, head_dim), F32)
    ear_anthro = jax.random.normal(ke, (B, ear_dim), F32)
    freq_idx = jax.random.randint(kf, (B,), 0, num_freq_bins)
    domain_idx = jax.random.randint(kd, (B,), 0, 4)

    # small-batch (grid-less) path
    out = conv_hyper_cnn_forward(params, sh_input, head_anthro, ear_anthro,
                                 freq_idx, domain_idx)
    out = jax.block_until_ready(out)
    assert out.shape == (B, 64) and out.dtype == F32
    _check(out, reference_forward(raw, sh_input, head_anthro, ear_anthro,
                                  freq_idx, domain_idx))

    # batched path (parallel batch grid, weights resident across grid steps)
    BB, TB = 64, 32
    kx2, kh2, ke2, kf2, kd2 = jax.random.split(jax.random.PRNGKey(1), 5)
    sh2 = jax.random.normal(kx2, (BB, L), F32)
    head2 = jax.random.normal(kh2, (BB, head_dim), F32)
    ear2 = jax.random.normal(ke2, (BB, ear_dim), F32)
    fidx2 = jax.random.randint(kf2, (BB,), 0, num_freq_bins)
    didx2 = jax.random.randint(kd2, (BB,), 0, 4)
    out2 = conv_hyper_cnn_forward(params, sh2, head2, ear2, fidx2, didx2, batch_tile=TB)
    out2 = jax.block_until_ready(out2)
    assert out2.shape == (BB, 64) and out2.dtype == F32
    _check(out2, reference_forward(raw, sh2, head2, ear2, fidx2, didx2))

    print("KERNEL_OK")
</pallas_src>

<mosaic_0001>
module attributes {stable_mosaic.version = 11 : i64} {
  func.func @kernel(%arg0: memref<2x16xbf16, #tpu.memory_space<vmem>>, %arg1: memref<2x25xbf16, #tpu.memory_space<vmem>>, %arg2: memref<2x256xf32, #tpu.memory_space<vmem>>, %arg3: memref<16x64xbf16, #tpu.memory_space<vmem>>, %arg4: memref<64x128xbf16, #tpu.memory_space<vmem>>, %arg5: memref<128x64xbf16, #tpu.memory_space<vmem>>, %arg6: memref<64x128xbf16, #tpu.memory_space<vmem>>, %arg7: memref<25x12xbf16, #tpu.memory_space<vmem>>, %arg8: memref<12x256xbf16, #tpu.memory_space<vmem>>, %arg9: memref<128x256xbf16, #tpu.memory_space<vmem>>, %arg10: memref<256x512xbf16, #tpu.memory_space<vmem>>, %arg11: memref<512x256xbf16, #tpu.memory_space<vmem>>, %arg12: memref<256x64xbf16, #tpu.memory_space<vmem>>, %arg13: memref<1x2048xf32, #tpu.memory_space<vmem>>, %arg14: memref<2x64xf32, #tpu.memory_space<vmem>>) attributes {dimension_semantics = [], scalar_prefetch = 0 : i64, scratch_operands = 0 : i64, tpu.core_type = #tpu.core_type<tc>} {
    %c0 = arith.constant 0 : index
    %c0_0 = arith.constant 0 : index
    %0 = vector.load %arg0[%c0, %c0_0] : memref<2x16xbf16, #tpu.memory_space<vmem>>, vector<2x16xbf16>
    %c0_1 = arith.constant 0 : index
    %c0_2 = arith.constant 0 : index
    %1 = vector.load %arg3[%c0_1, %c0_2] : memref<16x64xbf16, #tpu.memory_space<vmem>>, vector<16x64xbf16>
    %cst = arith.constant dense<0.000000e+00> : vector<2x64xf32>
    %2 = tpu.matmul %0, %1, %cst {dimension_numbers = #tpu.dot_dimension_numbers<[1], [0], [0], [1], [0, 0, 1, 1], [], []>} : vector<2x16xbf16>, vector<16x64xbf16>, vector<2x64xf32> -> vector<2x64xf32>
    %c0_3 = arith.constant 0 : index
    %c0_4 = arith.constant 0 : index
    %3 = vector.load %arg13[%c0_3, %c0_4] : memref<1x2048xf32, #tpu.memory_space<vmem>>, vector<1x64xf32>
    %4 = vector.broadcast %3 : vector<1x64xf32> to vector<2x64xf32>
    %5 = arith.addf %2, %4 : vector<2x64xf32>
    %cst_5 = arith.constant 0.000000e+00 : f32
    %6 = vector.broadcast %cst_5 : f32 to vector<2x64xf32>
    %7 = arith.maximumf %5, %6 : vector<2x64xf32>
    %8 = arith.truncf %7 : vector<2x64xf32> to vector<2x64xbf16>
    %c0_6 = arith.constant 0 : index
    %c0_7 = arith.constant 0 : index
    %9 = vector.load %arg4[%c0_6, %c0_7] : memref<64x128xbf16, #tpu.memory_space<vmem>>, vector<64x128xbf16>
    %cst_8 = arith.constant dense<0.000000e+00> : vector<2x128xf32>
    %10 = tpu.matmul %8, %9, %cst_8 {dimension_numbers = #tpu.dot_dimension_numbers<[1], [0], [0], [1], [0, 0, 1, 1], [], []>} : vector<2x64xbf16>, vector<64x128xbf16>, vector<2x128xf32> -> vector<2x128xf32>
    %c0_9 = arith.constant 0 : index
    %c128 = arith.constant 128 : index
    %11 = vector.load %arg13[%c0_9, %c128] : memref<1x2048xf32, #tpu.memory_space<vmem>>, vector<1x128xf32>
    %12 = vector.broadcast %11 : vector<1x128xf32> to vector<2x128xf32>
    %13 = arith.addf %10, %12 : vector<2x128xf32>
    %cst_10 = arith.constant 0.000000e+00 : f32
    %14 = vector.broadcast %cst_10 : f32 to vector<2x128xf32>
    %15 = arith.maximumf %13, %14 : vector<2x128xf32>
    %16 = arith.truncf %15 : vector<2x128xf32> to vector<2x128xbf16>
    %c0_11 = arith.constant 0 : index
    %c0_12 = arith.constant 0 : index
    %17 = vector.load %arg5[%c0_11, %c0_12] : memref<128x64xbf16, #tpu.memory_space<vmem>>, vector<128x64xbf16>
    %cst_13 = arith.constant dense<0.000000e+00> : vector<2x64xf32>
    %18 = tpu.matmul %16, %17, %cst_13 {dimension_numbers = #tpu.dot_dimension_numbers<[1], [0], [0], [1], [0, 0, 1, 1], [], []>} : vector<2x128xbf16>, vector<128x64xbf16>, vector<2x64xf32> -> vector<2x64xf32>
    %c0_14 = arith.constant 0 : index
    %c256 = arith.constant 256 : index
    %19 = vector.load %arg13[%c0_14, %c256] : memref<1x2048xf32, #tpu.memory_space<vmem>>, vector<1x64xf32>
    %20 = vector.broadcast %19 : vector<1x64xf32> to vector<2x64xf32>
    %21 = arith.addf %18, %20 : vector<2x64xf32>
    %cst_15 = arith.constant 0.000000e+00 : f32
    %22 = vector.broadcast %cst_15 : f32 to vector<2x64xf32>
    %23 = arith.maximumf %21, %22 : vector<2x64xf32>
    %24 = arith.truncf %23 : vector<2x64xf32> to vector<2x64xbf16>
    %c0_16 = arith.constant 0 : index
    %c0_17 = arith.constant 0 : index
    %25 = vector.load %arg6[%c0_16, %c0_17] : memref<64x128xbf16, #tpu.memory_space<vmem>>, vector<64x128xbf16>
    %cst_18 = arith.constant dense<0.000000e+00> : vector<2x128xf32>
    %26 = tpu.matmul %24, %25, %cst_18 {dimension_numbers = #tpu.dot_dimension_numbers<[1], [0], [0], [1], [0, 0, 1, 1], [], []>} : vector<2x64xbf16>, vector<64x128xbf16>, vector<2x128xf32> -> vector<2x128xf32>
    %c0_19 = arith.constant 0 : index
    %c384 = arith.constant 384 : index
    %27 = vector.load %arg13[%c0_19, %c384] : memref<1x2048xf32, #tpu.memory_space<vmem>>, vector<1x128xf32>
    %28 = vector.broadcast %27 : vector<1x128xf32> to vector<2x128xf32>
    %29 = arith.addf %26, %28 : vector<2x128xf32>
    %c0_20 = arith.constant 0 : index
    %c0_21 = arith.constant 0 : index
    %30 = vector.load %arg1[%c0_20, %c0_21] : memref<2x25xbf16, #tpu.memory_space<vmem>>, vector<2x25xbf16>
    %c0_22 = arith.constant 0 : index
    %c0_23 = arith.constant 0 : index
    %31 = vector.load %arg7[%c0_22, %c0_23] : memref<25x12xbf16, #tpu.memory_space<vmem>>, vector<25x12xbf16>
    %cst_24 = arith.constant dense<0.000000e+00> : vector<2x12xf32>
    %32 = tpu.matmul %30, %31, %cst_24 {dimension_numbers = #tpu.dot_dimension_numbers<[1], [0], [0], [1], [0, 0, 1, 1], [], []>} : vector<2x25xbf16>, vector<25x12xbf16>, vector<2x12xf32> -> vector<2x12xf32>
    %c0_25 = arith.constant 0 : index
    %c512 = arith.constant 512 : index
    %33 = vector.load %arg13[%c0_25, %c512] : memref<1x2048xf32, #tpu.memory_space<vmem>>, vector<1x12xf32>
    %34 = vector.broadcast %33 : vector<1x12xf32> to vector<2x12xf32>
    %35 = arith.addf %32, %34 : vector<2x12xf32>
    %cst_26 = arith.constant 0.000000e+00 : f32
    %36 = vector.broadcast %cst_26 : f32 to vector<2x12xf32>
    %37 = arith.maximumf %35, %36 : vector<2x12xf32>
    %38 = arith.truncf %37 : vector<2x12xf32> to vector<2x12xbf16>
    %c0_27 = arith.constant 0 : index
    %c0_28 = arith.constant 0 : index
    %39 = vector.load %arg8[%c0_27, %c0_28] : memref<12x256xbf16, #tpu.memory_space<vmem>>, vector<12x256xbf16>
    %cst_29 = arith.constant dense<0.000000e+00> : vector<2x256xf32>
    %40 = tpu.matmul %38, %39, %cst_29 {dimension_numbers = #tpu.dot_dimension_numbers<[1], [0], [0], [1], [0, 0, 1, 1], [], []>} : vector<2x12xbf16>, vector<12x256xbf16>, vector<2x256xf32> -> vector<2x256xf32>
    %c0_30 = arith.constant 0 : index
    %c0_31 = arith.constant 0 : index
    %41 = vector.load %arg2[%c0_30, %c0_31] : memref<2x256xf32, #tpu.memory_space<vmem>>, vector<2x256xf32>
    %42 = arith.addf %40, %41 : vector<2x256xf32>
    %c0_32 = arith.constant 0 : index
    %c640 = arith.constant 640 : index
    %43 = vector.load %arg13[%c0_32, %c640] : memref<1x2048xf32, #tpu.memory_space<vmem>>, vector<1x256xf32>
    %44 = vector.broadcast %43 : vector<1x256xf32> to vector<2x256xf32>
    %45 = arith.addf %42, %44 : vector<2x256xf32>
    %46 = vector.extract_strided_slice %45 {offsets = [0, 0], sizes = [2, 128], strides = [1, 1]} : vector<2x256xf32> to vector<2x128xf32>
    %47 = arith.mulf %29, %46 : vector<2x128xf32>
    %48 = vector.extract_strided_slice %45 {offsets = [0, 128], sizes = [2, 128], strides = [1, 1]} : vector<2x256xf32> to vector<2x128xf32>
    %49 = arith.addf %47, %48 : vector<2x128xf32>
    %50 = arith.truncf %49 : vector<2x128xf32> to vector<2x128xbf16>
    %c0_33 = arith.constant 0 : index
    %c0_34 = arith.constant 0 : index
    %51 = vector.load %arg9[%c0_33, %c0_34] : memref<128x256xbf16, #tpu.memory_space<vmem>>, vector<128x256xbf16>
    %cst_35 = arith.constant dense<0.000000e+00> : vector<2x256xf32>
    %52 = tpu.matmul %50, %51, %cst_35 {dimension_numbers = #tpu.dot_dimension_numbers<[1], [0], [0], [1], [0, 0, 1, 1], [], []>} : vector<2x128xbf16>, vector<128x256xbf16>, vector<2x256xf32> -> vector<2x256xf32>
    %c0_36 = arith.constant 0 : index
    %c896 = arith.constant 896 : index
    %53 = vector.load %arg13[%c0_36, %c896] : memref<1x2048xf32, #tpu.memory_space<vmem>>, vector<1x256xf32>
    %54 = vector.broadcast %53 : vector<1x256xf32> to vector<2x256xf32>
    %55 = arith.addf %52, %54 : vector<2x256xf32>
    %56 = arith.truncf %55 : vector<2x256xf32> to vector<2x256xbf16>
    %c0_37 = arith.constant 0 : index
    %c0_38 = arith.constant 0 : index
    %57 = vector.load %arg10[%c0_37, %c0_38] : memref<256x512xbf16, #tpu.memory_space<vmem>>, vector<256x512xbf16>
    %cst_39 = arith.constant dense<0.000000e+00> : vector<2x512xf32>
    %58 = tpu.matmul %56, %57, %cst_39 {dimension_numbers = #tpu.dot_dimension_numbers<[1], [0], [0], [1], [0, 0, 1, 1], [], []>} : vector<2x256xbf16>, vector<256x512xbf16>, vector<2x512xf32> -> vector<2x512xf32>
    %c0_40 = arith.constant 0 : index
    %c1152 = arith.constant 1152 : index
    %59 = vector.load %arg13[%c0_40, %c1152] : memref<1x2048xf32, #tpu.memory_space<vmem>>, vector<1x512xf32>
    %60 = vector.broadcast %59 : vector<1x512xf32> to vector<2x512xf32>
    %61 = arith.addf %58, %60 : vector<2x512xf32>
    %cst_41 = arith.constant 0.000000e+00 : f32
    %62 = vector.broadcast %cst_41 : f32 to vector<2x512xf32>
    %63 = arith.maximumf %61, %62 : vector<2x512xf32>
    %64 = arith.truncf %63 : vector<2x512xf32> to vector<2x512xbf16>
    %c0_42 = arith.constant 0 : index
    %c0_43 = arith.constant 0 : index
    %65 = vector.load %arg11[%c0_42, %c0_43] : memref<512x256xbf16, #tpu.memory_space<vmem>>, vector<512x256xbf16>
    %cst_44 = arith.constant dense<0.000000e+00> : vector<2x256xf32>
    %66 = tpu.matmul %64, %65, %cst_44 {dimension_numbers = #tpu.dot_dimension_numbers<[1], [0], [0], [1], [0, 0, 1, 1], [], []>} : vector<2x512xbf16>, vector<512x256xbf16>, vector<2x256xf32> -> vector<2x256xf32>
    %c0_45 = arith.constant 0 : index
    %c1664 = arith.constant 1664 : index
    %67 = vector.load %arg13[%c0_45, %c1664] : memref<1x2048xf32, #tpu.memory_space<vmem>>, vector<1x256xf32>
    %68 = vector.broadcast %67 : vector<1x256xf32> to vector<2x256xf32>
    %69 = arith.addf %66, %68 : vector<2x256xf32>
    %cst_46 = arith.constant 0.000000e+00 : f32
    %70 = vector.broadcast %cst_46 : f32 to vector<2x256xf32>
    %71 = arith.maximumf %69, %70 : vector<2x256xf32>
    %72 = arith.truncf %71 : vector<2x256xf32> to vector<2x256xbf16>
    %c0_47 = arith.constant 0 : index
    %c0_48 = arith.constant 0 : index
    %73 = vector.load %arg12[%c0_47, %c0_48] : memref<256x64xbf16, #tpu.memory_space<vmem>>, vector<256x64xbf16>
    %cst_49 = arith.constant dense<0.000000e+00> : vector<2x64xf32>
    %74 = tpu.matmul %72, %73, %cst_49 {dimension_numbers = #tpu.dot_dimension_numbers<[1], [0], [0], [1], [0, 0, 1, 1], [], []>} : vector<2x256xbf16>, vector<256x64xbf16>, vector<2x64xf32> -> vector<2x64xf32>
    %c0_50 = arith.constant 0 : index
    %c1920 = arith.constant 1920 : index
    %75 = vector.load %arg13[%c0_50, %c1920] : memref<1x2048xf32, #tpu.memory_space<vmem>>, vector<1x64xf32>
    %76 = vector.broadcast %75 : vector<1x64xf32> to vector<2x64xf32>
    %77 = arith.addf %74, %76 : vector<2x64xf32>
    %c0_51 = arith.constant 0 : index
    %c0_52 = arith.constant 0 : index
    %78 = vector.load %arg14[%c0_51, %c0_52] : memref<2x64xf32, #tpu.memory_space<vmem>>, vector<2x64xf32>
    tpu.vector_store %arg14[%c0_51, %c0_52], %77 {strides = array<i32>} : memref<2x64xf32, #tpu.memory_space<vmem>>, vector<2x64xf32>,
    return
  }
}

</mosaic_0001>

<bundles_post_ra>
// kernel: tpu_custom_call.1
= control target key start
LH: loop header
LB: loop body
LE: loop exit
PB: predicated region body
PF: predicated region fallthrough
CT: control target
= control target key end

     0   :  { %19 = vsyncpa [#allocation3], 0  ;;  %s2991_s0 = inlined_call_operand.vmem [shape: bf16[2,16], index: 0, kind: input, shape index: {}]   ;;  %s2992_s1 = inlined_call_operand.hbm [shape: bf16[2,25], index: 1, kind: input, shape index: {}]   ;;  %s2993_s2 = inlined_call_operand.hbm [shape: f32[2,256], index: 2, kind: input, shape index: {}]   ;;  %s2994_s3 = inlined_call_operand.hbm [shape: bf16[16,64], index: 3, kind: input, shape index: {}]   ;;  %s2995_s4 = inlined_call_operand.vmem [shape: bf16[64,128], index: 4, kind: input, shape index: {}]   ;;  %s2996_s5 = inlined_call_operand.vmem [shape: bf16[128,64], index: 5, kind: input, shape index: {}]   ;;  %s2997_s6 = inlined_call_operand.vmem [shape: bf16[64,128], index: 6, kind: input, shape index: {}]   ;;  %s2998_s7 = inlined_call_operand.vmem [shape: bf16[25,12], index: 7, kind: input, shape index: {}]   ;;  %s2999_s8 = inlined_call_operand.vmem [shape: bf16[12,256], index: 8, kind: input, shape index: {}]   ;;  %s3000_s9 = inlined_call_operand.vmem [shape: bf16[128,256], index: 9, kind: input, shape index: {}]   ;;  %s3001_s10 = inlined_call_operand.hbm [shape: bf16[256,512], index: 10, kind: input, shape index: {}]   ;;  %s3002_s11 = inlined_call_operand.hbm [shape: bf16[512,256], index: 11, kind: input, shape index: {}]   ;;  %s3003_s12 = inlined_call_operand.vmem [shape: bf16[256,64], index: 12, kind: input, shape index: {}]   ;;  %s3004_s13 = inlined_call_operand.vmem [shape: f32[1,2048], index: 13, kind: input, shape index: {}]   ;;  %s3005_s14 = inlined_call_operand.hbm [shape: f32[2,64], index: 14, kind: output, shape index: {}]  }
   0x1   :  { %20 = vsyncpa [#allocation6], 0 }
   0x2   :  { %21 = vsyncpa [#allocation9], 0 }
   0x3   :  { %22 = vsyncpa [#allocation4], 0  ;;  %s2641_s29 = smov [#allocation5]   ;;  %s2642_s15 = smov [#allocation8]  }
   0x4   :  { %s41_s30 = sshll.u32 %s2641_s29, 4  ;;  %s74_s16 = sshll.u32 %s2642_s15, 4  ;;  %s42_s30 = int_to_ptr.vmem [resolvable:$true] %s41_s30  ;;  %s75_s16 = int_to_ptr.vmem [resolvable:$true] %s74_s16 }
   0x5   :  { %s2521_s17 = scalar_lea.vmem %s42_s30, 64  ;;  %p2526_p1 = scmp.lt.s32.totalorder %s42_s30, %s42_s30 }
   0x6   :  { %p2522_p0 = scmp.ne.s32.totalorder %s42_s30, %s2521_s17  ;;  %p2527_p2 = scmp.lt.s32.totalorder %s2521_s17, %s2521_s17 }
   0x8   :  { %p2528_p3 = por %p2527_p2, %p2526_p1 }
   0xa   :  { %p2529_p4 = pnand %p2528_p3, %p2522_p0 }
   0xc   :  { %2532 = shalt.err (!%p2529_p4)
}
   0xd   :  { %44 = dma.hbm_to_vmem [thread:$0]  %s2993_s2, 64, %s42_s30, [#allocation6]  }
   0xe   :  { %s2541_s20 = scalar_lea.vmem %s75_s16, 8192  ;;  %p2546_p6 = scmp.lt.s32.totalorder %s75_s16, %s75_s16 }
   0xf   :  { %p2542_p5 = scmp.ne.s32.totalorder %s75_s16, %s2541_s20  ;;  %p2547_p7 = scmp.lt.s32.totalorder %s2541_s20, %s2541_s20 }
  0x11   :  { %p2548_p8 = por %p2547_p7, %p2546_p6 }
  0x13   :  { %p2549_p9 = pnand %p2548_p8, %p2542_p5 }
  0x15   :  { %2552 = shalt.err (!%p2549_p9)
}
  0x16   :  { %s2643_s21 = smov 256   ;;  %s2644_s22 = smov 16  }
  0x17   :  { %80 = dma.hbm_to_vmem [thread:$0]  %s3001_s10, 8192, %s75_s16, [#allocation9], %s2643_s21, %s2643_s21, %s2644_s22  }
  0x18   :  { %s2645_s25 = smov [#allocation2]   ;;  %s2646_s27 = smov [#allocation7]  }
  0x19   :  { %s31_s26 = sshll.u32 %s2645_s25, 4  ;;  %s50_s28 = sshll.u32 %s2646_s27, 4  ;;  %s32_s26 = int_to_ptr.vmem [resolvable:$true] %s31_s26  ;;  %s51_s28 = int_to_ptr.vmem [resolvable:$true] %s50_s28 }
  0x1a   :  { %s2561_s2 = scalar_lea.vmem %s32_s26, 16  ;;  %s2565_s29 = scalar_lea.vmem %s32_s26, 32 }
  0x1b   :  { %p2562_p10 = scmp.ne.s32.totalorder %s32_s26, %s2561_s2  ;;  %p2566_p11 = scmp.lt.s32.totalorder %s32_s26, %s32_s26 }
  0x1c   :  { %p2567_p12 = scmp.lt.s32.totalorder %s2565_s29, %s2561_s2 }
  0x1e   :  { %p2568_p13 = por %p2567_p12, %p2566_p11 }
  0x20   :  { %p2569_p0 = pnand %p2568_p13, %p2562_p10 }
  0x22   :  { %2572 = shalt.err (!%p2569_p0)
}
  0x23   :  { %34 = dma.hbm_to_vmem [thread:$0]  %s2992_s1, 16, %s32_s26, [#allocation3]  }
  0x24   :  { %s2581_s17 = scalar_lea.vmem %s51_s28, 128  ;;  %p2586_p2 = scmp.lt.s32.totalorder %s51_s28, %s51_s28 }
  0x25   :  { %p2582_p1 = scmp.ne.s32.totalorder %s51_s28, %s2581_s17  ;;  %p2587_p3 = scmp.lt.s32.totalorder %s2581_s17, %s2581_s17 }
  0x27   :  { %p2588_p4 = por %p2587_p3, %p2586_p2 }
  0x29   :  { %p2589_p5 = pnand %p2588_p4, %p2582_p1 }
  0x2b   :  { %2592 = shalt.err (!%p2589_p5)
}
  0x2c   :  { %s2647_s10 = smov 64   ;;  %s2648_s16 = smov 4  }
  0x2d   :  { %56 = dma.hbm_to_vmem [thread:$0]  %s2994_s3, 128, %s51_s28, [#allocation6], %s2647_s10, %s2647_s10, %s2648_s16  }
  0x2e   :  { %s2649_s20 = smov [#allocation10]  }
  0x2f   :  { %s86_s21 = sshll.u32 %s2649_s20, 4  ;;  %s87_s21 = int_to_ptr.vmem [resolvable:$true] %s86_s21 }
  0x30   :  { %s2601_s22 = scalar_lea.vmem %s87_s21, 8192  ;;  %p2606_p7 = scmp.lt.s32.totalorder %s87_s21, %s87_s21 }
  0x31   :  { %p2602_p6 = scmp.ne.s32.totalorder %s87_s21, %s2601_s22  ;;  %p2607_p8 = scmp.lt.s32.totalorder %s2601_s22, %s2601_s22 }
  0x33   :  { %p2608_p9 = por %p2607_p8, %p2606_p7 }
  0x35   :  { %p2609_p10 = pnand %p2608_p9, %p2602_p6 }
  0x37   :  { %2612 = shalt.err (!%p2609_p10)
}
  0x38   :  { %s2650_s1 = smov 128   ;;  %s2651_s23 = smov 8  }
  0x39   :  { %92 = dma.hbm_to_vmem [thread:$0]  %s3002_s11, 8192, %s87_s21, [#allocation9], %s2650_s1, %s2650_s1, %s2651_s23  }
  0x3a   :  { %2633 = dma.done.wait [#allocation3], 16  }
  0x3b   :  { %2634 = vsyncadd [#allocation3], 4294967280 }
  0x3c   :  { %2635 = dma.done.wait [#allocation6], 192  }
  0x3d   :  { %2636 = vsyncadd [#allocation6], 4294967104 }
  0x3e   :  { %2637 = dma.done.wait [#allocation9], 16384  }
  0x3f   :  { %2638 = vsyncadd [#allocation9], 4294950912  ;;  %v2652_v0 = vmov 0.0   ;;  %vm2653_vm0 = vmmov 0   ;;  %v2259_v1 = vld [vmem:[#allocation7] sm:$0xff]   ;;  %vm129_vm1 = vcmask 130048  }
  0x40   :  { %2185 = vmatprep.subr.bf16.mxu0 %v2652_v0  ;;  %2187 = vmatprep.mubr.msk.bf16.mxu0 %vm2653_vm0, %v2652_v0  ;;  %v113_v2 = vld [vmem:[%s2991_s0] sm:$0x1]  ;;  %v2260_v3 = vld [vmem:[%s2995_s4 + $0x18] sm:$0xff]   ;;  %v2261_v4 = vld [vmem:[%s2995_s4 + $0x10] sm:$0xff]   ;;  %vm214_vm2 = vcmask 523264   ;;  %vm482_vm3 = vcmask 1043456  }
  0x41   :  { %2191 = vmatprep.subr.bf16.mxu1 %v2652_v0  ;;  %2199 = vmatprep.mubr.msk.bf16.mxu1 %vm2653_vm0, %v2652_v0  ;;  %v2262_v5 = vld [vmem:[%s2995_s4 + $0x8] sm:$0xff]   ;;  %v2263_v6 = vld [vmem:[%s2995_s4] sm:$0xff]   ;;  %v2264_v7 = vld [vmem:[%s2996_s5 + $0x38] sm:$0xff]   ;;  %vm483_vm4 = vcmask 1044480   ;;  %v2654_v36 = vmov 65535   ;;  %vm478_vm5 = vcmask 203776  }
  0x42   :  { %2186 = vmatpush3.bf16.msra.mxu0 %v2259_v1  ;;  %2192 = vmatpush3.bf16.msra.mxu1 %v2260_v3  ;;  %v2265_v8 = vld [vmem:[%s2996_s5 + $0x30] sm:$0xff]   ;;  %v2266_v9 = vld [vmem:[%s2996_s5 + $0x28] sm:$0xff]   ;;  %v2267_v10 = vld [vmem:[%s2996_s5 + $0x20] sm:$0xff]   ;;  %v484_v37 = vsel %vm482_vm3, 4294967295, %v2654_v36  ;;  %vm557_vm6 = vcmask 1045504   ;;  %v2655_v53 = vmov 0  }
  0x43   :  { %2203 = vmatprep.subr.bf16.mxu0 %v2652_v0  ;;  %2193 = vmatprep.subr.bf16.mxu1 %v2652_v0  ;;  %v2268_v11 = vld [vmem:[%s2996_s5 + $0x18] sm:$0xff]   ;;  %v2269_v12 = vld [vmem:[%s2996_s5 + $0x10] sm:$0xff]   ;;  %v1945_v13 = vld [vmem:[%s3004_s13] ss:$0 sm:$0xff]  ;;  %v485_v41 = vsel %vm483_vm4, %v484_v37, 0  ;;  %vm553_vm7 = vcmask 97280  }
  0x44   :  { %v2270_v21 = vld [vmem:[%s2996_s5 + $0x8] sm:$0xff]   ;;  %v2271_v22 = vld [vmem:[%s2996_s5] sm:$0xff]   ;;  %v2272_v23 = vld [vmem:[%s2997_s6 + $0x18] sm:$0xff]   ;;  %vm1926_vm8 = vcmask 517120  }
  0x45   :  { %2188 = vmatmul.mubr.msk.bf16.vlgmr.msra.gmra.mxu0 %vm129_vm1, %v113_v2  ;;  %v2273_v24 = vld [vmem:[%s2997_s6 + $0x10] sm:$0xff]   ;;  %v2274_v25 = vld [vmem:[%s2997_s6 + $0x8] sm:$0xff]   ;;  %v1948_v26 = vld [vmem:[%s3004_s13 + $0x1] ss:$0 sm:$0xff] }
  0x46   :  { %2219 = vmatprep.mubr.msk.bf16.mxu0 %vm2653_vm0, %v2652_v0  ;;  %2194 = vmatpush3.bf16.msra.mxu1 %v2261_v4  ;;  %v2275_v34 = vld [vmem:[%s2997_s6] sm:$0xff]   ;;  %v2276_v39 = vld [vmem:[%s2998_s7 + $0x8] sm:$0x1f]   ;;  %v2281_v54 = vld [vmem:[%s3000_s9 + $0x70] ss:$8 sps:$4 sm:$0xff]   ;;  %s2656_s6 = smov [#allocation11]  }
  0x47   :  { %2195 = vmatprep.subr.bf16.mxu1 %v2652_v0  ;;  %2204 = vmatpush3.bf16.msra.mxu0 %v2264_v7  ;;  %v1954_v35 = vld [vmem:[%s3004_s13 + $0x2] ss:$0 sm:$0xff]  ;;  %v487_v45 = vand.u32 %v2276_v39, %v485_v41  ;;  %v455_v49 = vld [vmem:[#allocation2] sm:$0x1]  ;;  %v2283_v55 = vld [vmem:[%s3000_s9 + $0x74] ss:$8 sps:$4 sm:$0xff]  }
  0x48   :  { %2205 = vmatprep.subr.bf16.mxu0 %v2652_v0  ;;  %v2277_v48 = vld [vmem:[%s2998_s7] sm:$0xff]   ;;  %v2289_v58 = vld [vmem:[%s3000_s9 + $0x54] ss:$8 sps:$4 sm:$0xff]   ;;  %v2287_v59 = vld [vmem:[%s3000_s9 + $0x50] ss:$8 sps:$4 sm:$0xff]   ;;  %s1934_s22 = sshll.u32 %s2656_s6, 4  ;;  %s1935_s22 = int_to_ptr.vmem [resolvable:$true] %s1934_s22 }
  0x49   :  { %v2278_v50 = vld [vmem:[%s2999_s8 + $0x4] ss:$8 sps:$4 sm:$0x3f]   ;;  %v2280_v51 = vld [vmem:[%s2999_s8] ss:$8 sps:$4 sm:$0x3f]   ;;  %p2618_p12 = scmp.lt.s32.totalorder %s1935_s22, %s1935_s22 }
  0x4a   :  { %2196 = vmatpush3.bf16.msra.mxu1 %v2262_v5  ;;  %v559_v52 = vsel %vm557_vm6, %v2280_v51, 0  ;;  %v2286_v56 = vld [vmem:[%s3000_s9 + $0x64] ss:$8 sps:$4 sm:$0xff]   ;;  %v2284_v57 = vld [vmem:[%s3000_s9 + $0x60] ss:$8 sps:$4 sm:$0xff]   ;;  %s2613_s1 = scalar_lea.vmem %s1935_s22, 32 }
  0x4b   :  { %2197 = vmatprep.subr.bf16.mxu1 %v2652_v0  ;;  %2206 = vmatpush3.bf16.msra.mxu0 %v2265_v8  ;;  %v2292_v60 = vld [vmem:[%s3000_s9 + $0x44] ss:$8 sps:$4 sm:$0xff]   ;;  %v2290_v61 = vld [vmem:[%s3000_s9 + $0x40] ss:$8 sps:$4 sm:$0xff]   ;;  %v2295_v62 = vld [vmem:[%s3000_s9 + $0x34] ss:$8 sps:$4 sm:$0xff]   ;;  %p2614_p11 = scmp.ne.s32.totalorder %s1935_s22, %s2613_s1  ;;  %p2619_p13 = scmp.lt.s32.totalorder %s2613_s1, %s2613_s1 }
  0x4c   :  { %2207 = vmatprep.subr.bf16.mxu0 %v2652_v0  ;;  %v2293_v63 = vld [vmem:[%s3000_s9 + $0x30] ss:$8 sps:$4 sm:$0xff]   ;;  %v2296_v1 = vld [vmem:[%s3000_s9 + $0x20] ss:$8 sps:$4 sm:$0xff]   ;;  %v605_v51 = vld [vmem:[%s3004_s13 + $0x5] sm:$0x3] }
  0x4d   :  { %v2353_v36 = vld [vmem:[#allocation8 + $0x1e0] ss:$16 sps:$4 sm:$0xff]   ;;  %v2361_v37 = vld [vmem:[#allocation8 + $0x1c4] ss:$16 sps:$4 sm:$0xff]   ;;  %p2620_p0 = por %p2619_p13, %p2618_p12 }
  0x4e   :  { %2198 = vmatpush3.bf16.msra.mxu1 %v2263_v6  ;;  %v1969_v6 = vld [vmem:[%s3004_s13 + $0x4] ss:$0 sm:$0xff] }
  0x4f   :  { %2223 = vmatprep.subr.bf16.mxu1 %v2652_v0  ;;  %2208 = vmatpush3.bf16.msra.mxu0 %v2266_v9  ;;  %v2367_v39 = vld [vmem:[#allocation8 + $0x1a4] ss:$16 sps:$4 sm:$0xff]   ;;  %p2621_p1 = pnand %p2620_p0, %p2614_p11 }
  0x50   :  { %2209 = vmatprep.subr.bf16.mxu0 %v2652_v0  ;;  %v2373_v41 = vld [vmem:[#allocation8 + $0x184] ss:$16 sps:$4 sm:$0xff]  }
  0x53   :  { %2210 = vmatpush3.bf16.msra.mxu0 %v2267_v10 }
  0x54   :  { %2211 = vmatprep.subr.bf16.mxu0 %v2652_v0 }
  0x57   :  { %2212 = vmatpush3.bf16.msra.mxu0 %v2268_v11 }
  0x58   :  { %2213 = vmatprep.subr.bf16.mxu0 %v2652_v0 }
  0x5b   :  { %2214 = vmatpush3.bf16.msra.mxu0 %v2269_v12 }
  0x5c   :  { %2215 = vmatprep.subr.bf16.mxu0 %v2652_v0 }
  0x5f   :  { %2216 = vmatpush3.bf16.msra.mxu0 %v2270_v21  ;;  %v2313_v21 = vld [vmem:[#allocation8 + $0xc4] ss:$16 sps:$4 sm:$0xff]  }
  0x60   :  { %2217 = vmatprep.subr.bf16.mxu0 %v2652_v0 }
  0x63   :  { %2218 = vmatpush3.bf16.msra.mxu0 %v2271_v22  ;;  %v2311_v22 = vld [vmem:[#allocation8 + $0xc0] ss:$16 sps:$4 sm:$0xff]  }
  0x64   :  { %1976 = vmatprep.subr.msk.bf16.mxu0 %vm557_vm6, %v2278_v50  ;;  %v1975_v50 = vld.sshfl [vmem:[#allocation5] sm:$0x33 pattern:$0x76325410] }
 0x105   :  { %v167_v14 = vpop.f32.mrf.mxu0 }
 0x106   :  { %v168_v15 = vadd.f32 %v1945_v13, %v167_v14  ;;  %v2301_v14 = vld [vmem:[%s3000_s9 + $0x14] ss:$8 sps:$4 sm:$0xff]  }
 0x107   :  { %v2189_v16 = vpop.f32.mrf.mxu0 }
 0x108   :  { %v173_v17 = vmax.f32 %v168_v15, 0.0  ;;  %v2299_v15 = vld [vmem:[%s3000_s9 + $0x10] ss:$8 sps:$4 sm:$0xff]   ;;  %v2304_v16 = vld [vmem:[%s3000_s9 + $0x4] ss:$8 sps:$4 sm:$0xff]  }
 0x109   :  { %v170_v18 = vpop.f32.mrf.mxu0 }
 0x10a   :  { %v174_v19 = vpack.c.bf16 %v173_v17, %v173_v17  ;;  %v2302_v17 = vld [vmem:[%s3000_s9] ss:$8 sps:$4 sm:$0xff]  }
 0x10b   :  { %v2190_v20 = vpop.f32.mrf.mxu0  ;;  %v2305_v18 = vld [vmem:[#allocation8 + $0xe0] ss:$16 sps:$4 sm:$0xff]  }
 0x10c   :  { %2200 = vmatmul.mubr.msk.bf16.vlgmr.msra.gmra.mxu1 %vm214_vm2, %v174_v19  ;;  %v2307_v19 = vld [vmem:[#allocation8 + $0xe4] ss:$16 sps:$4 sm:$0xff]   ;;  %v2310_v20 = vld [vmem:[#allocation8 + $0xec] ss:$16 sps:$4 sm:$0xff]  }
 0x10d   :  { %2231 = vmatprep.mubr.msk.bf16.mxu1 %vm2653_vm0, %v2652_v0  ;;  %2224 = vmatpush3.bf16.msra.mxu1 %v2272_v23  ;;  %v2319_v23 = vld [vmem:[#allocation8 + $0xa4] ss:$16 sps:$4 sm:$0xff]  }
 0x10e   :  { %2225 = vmatprep.subr.bf16.mxu1 %v2652_v0 }
 0x111   :  { %2226 = vmatpush3.bf16.msra.mxu1 %v2273_v24  ;;  %v2317_v24 = vld [vmem:[#allocation8 + $0xa0] ss:$16 sps:$4 sm:$0xff]  }
 0x112   :  { %2227 = vmatprep.subr.bf16.mxu1 %v2652_v0 }
 0x115   :  { %2228 = vmatpush3.bf16.msra.mxu1 %v2274_v25  ;;  %v2325_v25 = vld [vmem:[#allocation8 + $0x84] ss:$16 sps:$4 sm:$0xff]  }
 0x116   :  { %2229 = vmatprep.subr.bf16.mxu1 %v2652_v0 }
 0x119   :  { %2230 = vmatpush3.bf16.msra.mxu1 %v2275_v34  ;;  %v2347_v34 = vld [vmem:[#allocation8] ss:$16 sps:$4 sm:$0xff]  }
 0x11a   :  { %2235 = vmatprep.subr.bf16.mxu1 %v2652_v0 }
 0x1cc   :  { %v252_v27 = vpop.f32.mrf.mxu1 }
 0x1cd   :  { %v253_v28 = vadd.f32 %v1948_v26, %v252_v27  ;;  %v2323_v26 = vld [vmem:[#allocation8 + $0x80] ss:$16 sps:$4 sm:$0xff]   ;;  %v2331_v27 = vld [vmem:[#allocation8 + $0x64] ss:$16 sps:$4 sm:$0xff]  }
 0x1ce   :  { %v2201_v29 = vpop.f32.mrf.mxu1 }
 0x1cf   :  { %v258_v30 = vmax.f32 %v253_v28, 0.0  ;;  %v2329_v28 = vld [vmem:[#allocation8 + $0x60] ss:$16 sps:$4 sm:$0xff]   ;;  %v2337_v29 = vld [vmem:[#allocation8 + $0x44] ss:$16 sps:$4 sm:$0xff]  }
 0x1d0   :  { %v255_v31 = vpop.f32.mrf.mxu1 }
 0x1d1   :  { %v259_v32 = vpack.c.bf16 %v258_v30, %v258_v30  ;;  %v2335_v30 = vld [vmem:[#allocation8 + $0x40] ss:$16 sps:$4 sm:$0xff]   ;;  %v2343_v31 = vld [vmem:[#allocation8 + $0x24] ss:$16 sps:$4 sm:$0xff]  }
 0x1d2   :  { %v2202_v33 = vpop.f32.mrf.mxu1 }
 0x1d3   :  { %2220 = vmatmul.mubr.bf16.vlgmr.msra.gmra.mxu0 %v259_v32  ;;  %v2341_v32 = vld [vmem:[#allocation8 + $0x20] ss:$16 sps:$4 sm:$0xff]   ;;  %v2349_v33 = vld [vmem:[#allocation8 + $0x4] ss:$16 sps:$4 sm:$0xff]  }
 0x1d4   :  { %579 = vmatpush1.bf16.msra.mxu0 %v559_v52  ;;  %596 = vmatprep.mubr.bf16.mxu0 %v2655_v53 }
 0x1d5   :  { %1179 = vmatprep.subr.bf16.mxu0 %v2307_v19  ;;  %v2350_v19 = vld [vmem:[#allocation8 + $0x8] ss:$16 sps:$4 sm:$0xff]  }
 0x293   :  { %v365_v38 = vpop.f32.mrf.mxu0 }
 0x294   :  { %v366_v40 = vadd.f32 %v1954_v35, %v365_v38  ;;  %v2355_v35 = vld [vmem:[#allocation8 + $0x1e4] ss:$16 sps:$4 sm:$0xff]   ;;  %v2359_v38 = vld [vmem:[#allocation8 + $0x1c0] ss:$16 sps:$4 sm:$0xff]  }
 0x295   :  { %v2221_v42 = vpop.f32.mrf.mxu0 }
 0x296   :  { %v371_v43 = vmax.f32 %v366_v40, 0.0  ;;  %v2365_v40 = vld [vmem:[#allocation8 + $0x1a0] ss:$16 sps:$4 sm:$0xff]  }
 0x297   :  { %v368_v44 = vpop.f32.mrf.mxu0  ;;  %v2371_v42 = vld [vmem:[#allocation8 + $0x180] ss:$16 sps:$4 sm:$0xff]  }
 0x298   :  { %v372_v46 = vpack.c.bf16 %v371_v43, %v371_v43  ;;  %v2379_v43 = vld [vmem:[#allocation8 + $0x164] ss:$16 sps:$4 sm:$0xff]   ;;  %v2377_v44 = vld [vmem:[#allocation8 + $0x160] ss:$16 sps:$4 sm:$0xff]  }
 0x299   :  { %v2222_v47 = vpop.f32.mrf.mxu0 }
 0x29a   :  { %2232 = vmatmul.mubr.msk.bf16.vlgmr.msra.gmra.mxu1 %vm214_vm2, %v372_v46  ;;  %v2383_v46 = vld [vmem:[#allocation8 + $0x140] ss:$16 sps:$4 sm:$0xff]   ;;  %v607_v47 = vlaneseq }
 0x29b   :  { %2236 = vmatpush3.bf16.msra.mxu1 %v487_v45  ;;  %2239 = vmatprep.mubr.msk.bf16.mxu1 %vm2653_vm0, %v2652_v0  ;;  %v2385_v45 = vld [vmem:[#allocation8 + $0x144] ss:$16 sps:$4 sm:$0xff]  }
 0x29c   :  { %2237 = vmatprep.subr.bf16.mxu1 %v2652_v0  ;;  %v2298_v0 = vld [vmem:[%s3000_s9 + $0x24] ss:$8 sps:$4 sm:$0xff]  }
 0x29f   :  { %2238 = vmatpush3.bf16.msra.mxu1 %v2277_v48  ;;  %v2903_v48 = vshrl.u32 %v607_v47, 7 }
 0x2a0   :  { %730 = vmatprep.subr.bf16.mxu1 %v2283_v55  ;;  %v1963_v55 = vld [vmem:[%s3004_s13 + $0x3] ss:$0 sm:$0xff] }
 0x2a1   :  { %v2912_v52 = vsub.s32 1, %v2903_v48 }
 0x2a2   :  { %2240 = vmatmul.mubr.msk.bf16.vlgmr.msra.gmra.mxu1 %vm478_vm5, %v455_v49  ;;  %v2906_v49 = vsub.s32 0, %v2903_v48 }
 0x2a3   :  { %762 = vmatprep.mubr.bf16.mxu1 %v2655_v53  ;;  %731 = vmatpush1.bf16.msra.mxu1 %v2281_v54  ;;  %v550_v54 = vcombine.high %v1975_v50, %v1975_v50 }
 0x2a4   :  { %732 = vmatprep.subr.bf16.mxu1 %v2286_v56  ;;  %v610_v53 = vrot.slane %v605_v51, %v2906_v49 }
 0x2a7   :  { %733 = vmatpush1.bf16.msra.mxu1 %v2284_v57 }
 0x2a8   :  { %734 = vmatprep.subr.bf16.mxu1 %v2289_v58  ;;  %v614_v58 = vrot.slane %v605_v51, %v2912_v52 }
 0x2ab   :  { %735 = vmatpush1.bf16.msra.mxu1 %v2287_v59 }
 0x2ac   :  { %736 = vmatprep.subr.bf16.mxu1 %v2292_v60 }
 0x2af   :  { %737 = vmatpush1.bf16.msra.mxu1 %v2290_v61 }
 0x2b0   :  { %738 = vmatprep.subr.bf16.mxu1 %v2295_v62 }
 0x2b3   :  { %739 = vmatpush1.bf16.msra.mxu1 %v2293_v63 }
 0x2b4   :  { %740 = vmatprep.subr.bf16.mxu1 %v2298_v0 }
 0x2b7   :  { %741 = vmatpush1.bf16.msra.mxu1 %v2296_v1 }
 0x2b8   :  { %742 = vmatprep.subr.bf16.mxu1 %v2301_v14  ;;  %v2340_v14 = vld [vmem:[#allocation8 + $0x4c] ss:$16 sps:$4 sm:$0xff]  }
 0x2bb   :  { %743 = vmatpush1.bf16.msra.mxu1 %v2299_v15  ;;  %v2338_v15 = vld [vmem:[#allocation8 + $0x48] ss:$16 sps:$4 sm:$0xff]  }
 0x2bc   :  { %744 = vmatprep.subr.bf16.mxu1 %v2304_v16  ;;  %v2346_v16 = vld [vmem:[#allocation8 + $0x2c] ss:$16 sps:$4 sm:$0xff]  }
 0x2bf   :  { %745 = vmatpush1.bf16.msra.mxu1 %v2302_v17  ;;  %v2344_v17 = vld [vmem:[#allocation8 + $0x28] ss:$16 sps:$4 sm:$0xff]  }
 0x2c0   :  { %1220 = vmatprep.subr.bf16.mxu1 %v2310_v20  ;;  %v2358_v20 = vld [vmem:[#allocation8 + $0x1ec] ss:$16 sps:$4 sm:$0xff]  }
 0x35a   :  { %v2886_v2 = vpop.f32.mrf.mxu1 }
 0x35b   :  { %v450_v60 = vadd.f32 %v1963_v55, %v2886_v2  ;;  %v2326_v2 = vld [vmem:[#allocation8 + $0x88] ss:$16 sps:$4 sm:$0xff]  }
 0x35c   :  { %v2233_v3 = vpop.f32.mrf.mxu1  ;;  %v2404_v55 = vld [vmem:[#allocation10 + $0x170] ss:$8 sps:$4 sm:$0xff]  }
 0x35e   :  { %v452_v4 = vpop.f32.mrf.mxu1 }
 0x360   :  { %v2234_v5 = vpop.f32.mrf.mxu1 }
 0x361   :  { %v2308_v5 = vld [vmem:[#allocation8 + $0xe8] ss:$16 sps:$4 sm:$0xff]  }
 0x362   :  { %v523_v7 = vpop.f32.mrf.mxu1 }
 0x363   :  { %v524_v8 = vadd.f32 %v1969_v6, %v523_v7  ;;  %v2316_v7 = vld [vmem:[#allocation8 + $0xcc] ss:$16 sps:$4 sm:$0xff]  }
 0x364   :  { %v2241_v9 = vpop.f32.mrf.mxu1 }
 0x365   :  { %v529_v10 = vmax.f32 %v524_v8, 0.0  ;;  %v2314_v8 = vld [vmem:[#allocation8 + $0xc8] ss:$16 sps:$4 sm:$0xff]   ;;  %v2322_v9 = vld [vmem:[#allocation8 + $0xac] ss:$16 sps:$4 sm:$0xff]  }
 0x366   :  { %v526_v11 = vpop.f32.mrf.mxu1 }
 0x367   :  { %v530_v12 = vpack.c.bf16 %v529_v10, %v529_v10  ;;  %v2320_v10 = vld [vmem:[#allocation8 + $0xa8] ss:$16 sps:$4 sm:$0xff]   ;;  %v2328_v11 = vld [vmem:[#allocation8 + $0x8c] ss:$16 sps:$4 sm:$0xff]  }
 0x368   :  { %v2242_v13 = vpop.f32.mrf.mxu1 }
 0x369   :  { %1977 = vmatmul.mubr.msk.bf16.vlgmr.msra.gmra.mxu0 %vm553_vm7, %v530_v12  ;;  %v2334_v12 = vld [vmem:[#allocation8 + $0x6c] ss:$16 sps:$4 sm:$0xff]   ;;  %v2332_v13 = vld [vmem:[#allocation8 + $0x68] ss:$16 sps:$4 sm:$0xff]  }
 0x36a   :  { %1180 = vmatpush1.bf16.msra.mxu0 %v2305_v18  ;;  %v2352_v18 = vld [vmem:[#allocation8 + $0xc] ss:$16 sps:$4 sm:$0xff]  }
 0x36b   :  { %1181 = vmatprep.subr.bf16.mxu0 %v2313_v21  ;;  %v2356_v21 = vld [vmem:[#allocation8 + $0x1e8] ss:$16 sps:$4 sm:$0xff]  }
 0x36e   :  { %1182 = vmatpush1.bf16.msra.mxu0 %v2311_v22  ;;  %v2364_v22 = vld [vmem:[#allocation8 + $0x1cc] ss:$16 sps:$4 sm:$0xff]  }
 0x36f   :  { %1183 = vmatprep.subr.bf16.mxu0 %v2319_v23  ;;  %v2362_v23 = vld [vmem:[#allocation8 + $0x1c8] ss:$16 sps:$4 sm:$0xff]  }
 0x372   :  { %1184 = vmatpush1.bf16.msra.mxu0 %v2317_v24  ;;  %v2370_v24 = vld [vmem:[#allocation8 + $0x1ac] ss:$16 sps:$4 sm:$0xff]  }
 0x373   :  { %1185 = vmatprep.subr.bf16.mxu0 %v2325_v25  ;;  %v2368_v25 = vld [vmem:[#allocation8 + $0x1a8] ss:$16 sps:$4 sm:$0xff]  }
 0x376   :  { %1186 = vmatpush1.bf16.msra.mxu0 %v2323_v26  ;;  %v2376_v26 = vld [vmem:[#allocation8 + $0x18c] ss:$16 sps:$4 sm:$0xff]  }
 0x377   :  { %1187 = vmatprep.subr.bf16.mxu0 %v2331_v27  ;;  %v2374_v27 = vld [vmem:[#allocation8 + $0x188] ss:$16 sps:$4 sm:$0xff]  }
 0x37a   :  { %1188 = vmatpush1.bf16.msra.mxu0 %v2329_v28  ;;  %v2382_v28 = vld [vmem:[#allocation8 + $0x16c] ss:$16 sps:$4 sm:$0xff]  }
 0x37b   :  { %1189 = vmatprep.subr.bf16.mxu0 %v2337_v29  ;;  %v2380_v29 = vld [vmem:[#allocation8 + $0x168] ss:$16 sps:$4 sm:$0xff]  }
 0x37e   :  { %1190 = vmatpush1.bf16.msra.mxu0 %v2335_v30  ;;  %v2388_v30 = vld [vmem:[#allocation8 + $0x14c] ss:$16 sps:$4 sm:$0xff]  }
 0x37f   :  { %1191 = vmatprep.subr.bf16.mxu0 %v2343_v31  ;;  %v2386_v31 = vld [vmem:[#allocation8 + $0x148] ss:$16 sps:$4 sm:$0xff]  }
 0x382   :  { %1192 = vmatpush1.bf16.msra.mxu0 %v2341_v32  ;;  %v2391_v32 = vld [vmem:[#allocation8 + $0x124] ss:$16 sps:$4 sm:$0xff]  }
 0x383   :  { %1193 = vmatprep.subr.bf16.mxu0 %v2349_v33  ;;  %v2394_v33 = vld [vmem:[#allocation8 + $0x12c] ss:$16 sps:$4 sm:$0xff]  }
 0x386   :  { %1194 = vmatpush1.bf16.msra.mxu0 %v2347_v34  ;;  %v2389_v34 = vld [vmem:[#allocation8 + $0x120] ss:$16 sps:$4 sm:$0xff]  }
 0x387   :  { %1195 = vmatprep.subr.bf16.mxu0 %v2355_v35  ;;  %v2392_v35 = vld [vmem:[#allocation8 + $0x128] ss:$16 sps:$4 sm:$0xff]  }
 0x38a   :  { %1196 = vmatpush2.bf16.msra.mxu0 %v2353_v36  ;;  %v2397_v36 = vld [vmem:[#allocation8 + $0x104] ss:$16 sps:$4 sm:$0xff]  }
 0x38b   :  { %1197 = vmatprep.subr.bf16.mxu0 %v2361_v37  ;;  %v2400_v37 = vld [vmem:[#allocation8 + $0x10c] ss:$16 sps:$4 sm:$0xff]  }
 0x38e   :  { %1198 = vmatpush2.bf16.msra.mxu0 %v2359_v38  ;;  %v2395_v38 = vld [vmem:[#allocation8 + $0x100] ss:$16 sps:$4 sm:$0xff]  }
 0x38f   :  { %1199 = vmatprep.subr.bf16.mxu0 %v2367_v39  ;;  %v2398_v39 = vld [vmem:[#allocation8 + $0x108] ss:$16 sps:$4 sm:$0xff]  }
 0x392   :  { %1200 = vmatpush2.bf16.msra.mxu0 %v2365_v40  ;;  %v2403_v40 = vld [vmem:[#allocation10 + $0x74] ss:$8 sps:$4 sm:$0xff]  }
 0x393   :  { %1201 = vmatprep.subr.bf16.mxu0 %v2373_v41  ;;  %v2406_v41 = vld [vmem:[#allocation10 + $0x174] ss:$8 sps:$4 sm:$0xff]  }
 0x396   :  { %1202 = vmatpush2.bf16.msra.mxu0 %v2371_v42  ;;  %v638_v42 = vld [vmem:[%s3004_s13 + $0x7] sm:$0x3] }
 0x397   :  { %1203 = vmatprep.subr.bf16.mxu0 %v2379_v43  ;;  %v643_v43 = vrot.slane %v638_v42, %v2906_v49 }
 0x39a   :  { %1204 = vmatpush2.bf16.msra.mxu0 %v2377_v44  ;;  %v647_v44 = vrot.slane %v638_v42, %v2912_v52  ;;  %v2481_v42 = vld [vmem:[#allocation10 + $0xa4] ss:$8 sps:$4 sm:$0xff]  }
 0x39b   :  { %1205 = vmatprep.subr.bf16.mxu0 %v2385_v45 }
 0x39e   :  { %1206 = vmatpush2.bf16.msra.mxu0 %v2383_v46 }
 0x39f   :  { %1207 = vmatprep.subr.bf16.mxu0 %v2391_v32  ;;  %v2461_v32 = vld [vmem:[#allocation10 + $0xd0] ss:$8 sps:$4 sm:$0xff]  }
 0x3a2   :  { %1208 = vmatpush2.bf16.msra.mxu0 %v2389_v34  ;;  %v2469_v34 = vld [vmem:[#allocation10 + $0xc4] ss:$8 sps:$4 sm:$0xff]  }
 0x3a3   :  { %1209 = vmatprep.subr.bf16.mxu0 %v2397_v36  ;;  %v2467_v36 = vld [vmem:[#allocation10 + $0xc0] ss:$8 sps:$4 sm:$0xff]  }
 0x3a6   :  { %1210 = vmatpush2.bf16.msra.mxu0 %v2395_v38  ;;  %v2475_v38 = vld [vmem:[#allocation10 + $0xb4] ss:$8 sps:$4 sm:$0xff]  }
 0x3a7   :  { %1665 = vmatprep.subr.bf16.mxu0 %v2403_v40  ;;  %v2473_v40 = vld [vmem:[#allocation10 + $0xb0] ss:$8 sps:$4 sm:$0xff]  }
 0x429   :  { %v598_v56 = vpop.f32.mrf.mxu0 }
 0x42a   :  { %v599_v57 = vadd.f32 %v1975_v50, %v598_v56 }
 0x42b   :  { %v600_v59 = vpop.f32.mrf.mxu0 }
 0x42c   :  { %v617_v61 = vadd.f32 %v610_v53, %v599_v57  ;;  %v601_v62 = vadd.f32 %v600_v59, %v550_v54  ;;  %v2401_v54 = vld [vmem:[#allocation10 + $0x70] ss:$8 sps:$4 sm:$0xff]   ;;  %v2412_v59 = vld [vmem:[#allocation10 + $0x164] ss:$8 sps:$4 sm:$0xff]  }
 0x42d   :  { %v602_v63 = vpop.f32.mrf.mxu0 }
 0x42e   :  { %v619_v0 = vmul.f32 %v617_v61, %v450_v60  ;;  %v618_v1 = vadd.f32 %v614_v58, %v601_v62  ;;  %v2409_v58 = vld [vmem:[#allocation10 + $0x64] ss:$8 sps:$4 sm:$0xff]   ;;  %v2407_v60 = vld [vmem:[#allocation10 + $0x60] ss:$8 sps:$4 sm:$0xff]   ;;  %v2415_v62 = vld [vmem:[#allocation10 + $0x54] ss:$8 sps:$4 sm:$0xff]  }
 0x42f   :  { %v603_v3 = vpop.f32.mrf.mxu0  ;;  %v2410_v61 = vld [vmem:[#allocation10 + $0x160] ss:$8 sps:$4 sm:$0xff]   ;;  %v2418_v63 = vld [vmem:[#allocation10 + $0x154] ss:$8 sps:$4 sm:$0xff]  }
 0x430   :  { %v620_v4 = vadd.f32 %v619_v0, %v618_v1  ;;  %v2413_v0 = vld [vmem:[#allocation10 + $0x50] ss:$8 sps:$4 sm:$0xff]   ;;  %v2421_v3 = vld [vmem:[#allocation10 + $0x44] ss:$8 sps:$4 sm:$0xff]  }
 0x431   :  { %v2416_v1 = vld [vmem:[#allocation10 + $0x150] ss:$8 sps:$4 sm:$0xff]  }
 0x432   :  { %v621_v6 = vpack.c.bf16 %v620_v4, %v620_v4  ;;  %v2424_v4 = vld [vmem:[#allocation10 + $0x144] ss:$8 sps:$4 sm:$0xff]  }
 0x434   :  { %763 = vmatmul.mubr.bf16.vlgmr.msra.gmra.mxu1 %v621_v6  ;;  %v2422_v6 = vld [vmem:[#allocation10 + $0x140] ss:$8 sps:$4 sm:$0xff]  }
 0x435   :  { %1221 = vmatpush1.bf16.msra.mxu1 %v2308_v5  ;;  %v2419_v5 = vld [vmem:[#allocation10 + $0x40] ss:$8 sps:$4 sm:$0xff]  }
 0x436   :  { %1222 = vmatprep.subr.bf16.mxu1 %v2316_v7  ;;  %v2427_v7 = vld [vmem:[#allocation10 + $0x34] ss:$8 sps:$4 sm:$0xff]  }
 0x439   :  { %1223 = vmatpush1.bf16.msra.mxu1 %v2314_v8  ;;  %v2430_v8 = vld [vmem:[#allocation10 + $0x134] ss:$8 sps:$4 sm:$0xff]  }
 0x43a   :  { %1224 = vmatprep.subr.bf16.mxu1 %v2322_v9  ;;  %v2425_v9 = vld [vmem:[#allocation10 + $0x30] ss:$8 sps:$4 sm:$0xff]  }
 0x43d   :  { %1225 = vmatpush1.bf16.msra.mxu1 %v2320_v10  ;;  %v2428_v10 = vld [vmem:[#allocation10 + $0x130] ss:$8 sps:$4 sm:$0xff]  }
 0x43e   :  { %1226 = vmatprep.subr.bf16.mxu1 %v2328_v11  ;;  %v2433_v11 = vld [vmem:[#allocation10 + $0x24] ss:$8 sps:$4 sm:$0xff]  }
 0x441   :  { %1227 = vmatpush1.bf16.msra.mxu1 %v2326_v2  ;;  %v2436_v2 = vld [vmem:[#allocation10 + $0x124] ss:$8 sps:$4 sm:$0xff]  }
 0x442   :  { %1228 = vmatprep.subr.bf16.mxu1 %v2334_v12  ;;  %v2431_v12 = vld [vmem:[#allocation10 + $0x20] ss:$8 sps:$4 sm:$0xff]  }
 0x445   :  { %1229 = vmatpush1.bf16.msra.mxu1 %v2332_v13  ;;  %v2434_v13 = vld [vmem:[#allocation10 + $0x120] ss:$8 sps:$4 sm:$0xff]  }
 0x446   :  { %1230 = vmatprep.subr.bf16.mxu1 %v2340_v14  ;;  %v2439_v14 = vld [vmem:[#allocation10 + $0x14] ss:$8 sps:$4 sm:$0xff]  }
 0x449   :  { %1231 = vmatpush1.bf16.msra.mxu1 %v2338_v15  ;;  %v2442_v15 = vld [vmem:[#allocation10 + $0x114] ss:$8 sps:$4 sm:$0xff]  }
 0x44a   :  { %1232 = vmatprep.subr.bf16.mxu1 %v2346_v16  ;;  %v2437_v16 = vld [vmem:[#allocation10 + $0x10] ss:$8 sps:$4 sm:$0xff]  }
 0x44d   :  { %1233 = vmatpush1.bf16.msra.mxu1 %v2344_v17  ;;  %v2440_v17 = vld [vmem:[#allocation10 + $0x110] ss:$8 sps:$4 sm:$0xff]  }
 0x44e   :  { %1234 = vmatprep.subr.bf16.mxu1 %v2352_v18  ;;  %v2445_v18 = vld [vmem:[#allocation10 + $0x4] ss:$8 sps:$4 sm:$0xff]  }
 0x451   :  { %1235 = vmatpush1.bf16.msra.mxu1 %v2350_v19  ;;  %v2448_v19 = vld [vmem:[#allocation10 + $0x104] ss:$8 sps:$4 sm:$0xff]  }
 0x452   :  { %1236 = vmatprep.subr.bf16.mxu1 %v2358_v20  ;;  %v2443_v20 = vld [vmem:[#allocation10] ss:$8 sps:$4 sm:$0xff]  }
 0x455   :  { %1237 = vmatpush2.bf16.msra.mxu1 %v2356_v21  ;;  %v2446_v21 = vld [vmem:[#allocation10 + $0x100] ss:$8 sps:$4 sm:$0xff]  }
 0x456   :  { %1238 = vmatprep.subr.bf16.mxu1 %v2364_v22  ;;  %v2451_v22 = vld [vmem:[#allocation10 + $0xf4] ss:$8 sps:$4 sm:$0xff]  }
 0x459   :  { %1239 = vmatpush2.bf16.msra.mxu1 %v2362_v23  ;;  %v2454_v23 = vld [vmem:[#allocation10 + $0x1f4] ss:$8 sps:$4 sm:$0xff]  }
 0x45a   :  { %1240 = vmatprep.subr.bf16.mxu1 %v2370_v24  ;;  %v2449_v24 = vld [vmem:[#allocation10 + $0xf0] ss:$8 sps:$4 sm:$0xff]  }
 0x45d   :  { %1241 = vmatpush2.bf16.msra.mxu1 %v2368_v25  ;;  %v2452_v25 = vld [vmem:[#allocation10 + $0x1f0] ss:$8 sps:$4 sm:$0xff]  }
 0x45e   :  { %1242 = vmatprep.subr.bf16.mxu1 %v2376_v26  ;;  %v2457_v26 = vld [vmem:[#allocation10 + $0xe4] ss:$8 sps:$4 sm:$0xff]  }
 0x461   :  { %1243 = vmatpush2.bf16.msra.mxu1 %v2374_v27  ;;  %v2460_v27 = vld [vmem:[#allocation10 + $0x1e4] ss:$8 sps:$4 sm:$0xff]  }
 0x462   :  { %1244 = vmatprep.subr.bf16.mxu1 %v2382_v28  ;;  %v2455_v28 = vld [vmem:[#allocation10 + $0xe0] ss:$8 sps:$4 sm:$0xff]  }
 0x465   :  { %1245 = vmatpush2.bf16.msra.mxu1 %v2380_v29  ;;  %v2458_v29 = vld [vmem:[#allocation10 + $0x1e0] ss:$8 sps:$4 sm:$0xff]  }
 0x466   :  { %1246 = vmatprep.subr.bf16.mxu1 %v2388_v30  ;;  %v2463_v30 = vld [vmem:[#allocation10 + $0xd4] ss:$8 sps:$4 sm:$0xff]  }
 0x469   :  { %1247 = vmatpush2.bf16.msra.mxu1 %v2386_v31  ;;  %v2466_v31 = vld [vmem:[#allocation10 + $0x1d4] ss:$8 sps:$4 sm:$0xff]  }
 0x46a   :  { %1248 = vmatprep.subr.bf16.mxu1 %v2394_v33  ;;  %v2464_v33 = vld [vmem:[#allocation10 + $0x1d0] ss:$8 sps:$4 sm:$0xff]  }
 0x46d   :  { %1249 = vmatpush2.bf16.msra.mxu1 %v2392_v35  ;;  %v2472_v35 = vld [vmem:[#allocation10 + $0x1c4] ss:$8 sps:$4 sm:$0xff]  }
 0x46e   :  { %1250 = vmatprep.subr.bf16.mxu1 %v2400_v37  ;;  %v2470_v37 = vld [vmem:[#allocation10 + $0x1c0] ss:$8 sps:$4 sm:$0xff]  }
 0x471   :  { %1251 = vmatpush2.bf16.msra.mxu1 %v2398_v39  ;;  %v2478_v39 = vld [vmem:[#allocation10 + $0x1b4] ss:$8 sps:$4 sm:$0xff]  }
 0x472   :  { %1706 = vmatprep.subr.bf16.mxu1 %v2406_v41  ;;  %v2476_v41 = vld [vmem:[#allocation10 + $0x1b0] ss:$8 sps:$4 sm:$0xff]  }
 0x4f4   :  { %v764_v45 = vpop.f32.mrf.mxu1 }
 0x4f5   :  { %v765_v46 = vadd.f32 %v764_v45, %v643_v43  ;;  %v2484_v43 = vld [vmem:[#allocation10 + $0x1a4] ss:$8 sps:$4 sm:$0xff]   ;;  %v2482_v45 = vld [vmem:[#allocation10 + $0x1a0] ss:$8 sps:$4 sm:$0xff]  }
 0x4f6   :  { %v766_v47 = vpop.f32.mrf.mxu1 }
 0x4f7   :  { %v767_v50 = vadd.f32 %v766_v47, %v647_v44  ;;  %v771_v56 = vpack.c.bf16 %v765_v46, %v765_v46  ;;  %v2479_v44 = vld [vmem:[#allocation10 + $0xa0] ss:$8 sps:$4 sm:$0xff]   ;;  %v2487_v46 = vld [vmem:[#allocation10 + $0x94] ss:$8 sps:$4 sm:$0xff]  }
 0x4f8   :  { %v768_v51 = vpop.f32.mrf.mxu1  ;;  %v2490_v47 = vld [vmem:[#allocation10 + $0x194] ss:$8 sps:$4 sm:$0xff]  }
 0x4f9   :  { %v772_v53 = vpack.c.bf16 %v767_v50, %v767_v50  ;;  %v2485_v50 = vld [vmem:[#allocation10 + $0x90] ss:$8 sps:$4 sm:$0xff]  }
 0x4fa   :  { %v769_v57 = vpop.f32.mrf.mxu1  ;;  %v2488_v51 = vld [vmem:[#allocation10 + $0x190] ss:$8 sps:$4 sm:$0xff]  }
 0x4fb   :  { %1211 = vmatprep.mubr.bf16.mxu0 %v772_v53  ;;  %1252 = vmatprep.mubr.bf16.mxu1 %v772_v53  ;;  %v2493_v53 = vld [vmem:[#allocation10 + $0x84] ss:$8 sps:$4 sm:$0xff]  }
 0x4fc   :  { %1212 = vmatmul.mubr.bf16.vlgmr.msra.gmra.mxu0 %v771_v56  ;;  %1253 = vmatmul.mubr.bf16.vlgmr.msra.gmra.mxu1 %v771_v56  ;;  %v2494_v56 = vld [vmem:[#allocation10 + $0x180] ss:$8 sps:$4 sm:$0xff]  }
 0x4fd   :  { %1666 = vmatpush1.bf16.msra.mxu0 %v2401_v54  ;;  %1707 = vmatpush1.bf16.msra.mxu1 %v2404_v55  ;;  %v2496_v54 = vld [vmem:[#allocation10 + $0x184] ss:$8 sps:$4 sm:$0xff]   ;;  %v2491_v55 = vld [vmem:[#allocation10 + $0x80] ss:$8 sps:$4 sm:$0xff]  }
 0x4fe   :  { %1667 = vmatprep.subr.bf16.mxu0 %v2409_v58  ;;  %1708 = vmatprep.subr.bf16.mxu1 %v2412_v59  ;;  %v2497_v57 = vld [vmem:[%s3003_s12 + $0x78] sm:$0xff]   ;;  %v849_v58 = vsub.s32 2, %v2903_v48  ;;  %v837_v59 = vld [vmem:[%s3004_s13 + $0x9] sm:$0xf] }
 0x501   :  { %1668 = vmatpush1.bf16.msra.mxu0 %v2407_v60  ;;  %1709 = vmatpush1.bf16.msra.mxu1 %v2410_v61  ;;  %v853_v60 = vsub.s32 3, %v2903_v48  ;;  %v842_v61 = vrot.slane %v837_v59, %v2906_v49 }
 0x502   :  { %1669 = vmatprep.subr.bf16.mxu0 %v2415_v62  ;;  %1710 = vmatprep.subr.bf16.mxu1 %v2418_v63  ;;  %v850_v62 = vrot.slane %v837_v59, %v849_v58  ;;  %v846_v63 = vrot.slane %v837_v59, %v2912_v52 }
 0x505   :  { %1670 = vmatpush1.bf16.msra.mxu0 %v2413_v0  ;;  %1711 = vmatpush1.bf16.msra.mxu1 %v2416_v1  ;;  %v854_v0 = vrot.slane %v837_v59, %v853_v60 }
 0x506   :  { %1671 = vmatprep.subr.bf16.mxu0 %v2421_v3  ;;  %1712 = vmatprep.subr.bf16.mxu1 %v2424_v4 }
 0x509   :  { %1672 = vmatpush1.bf16.msra.mxu0 %v2419_v5  ;;  %1713 = vmatpush1.bf16.msra.mxu1 %v2422_v6 }
 0x50a   :  { %1673 = vmatprep.subr.bf16.mxu0 %v2427_v7  ;;  %1714 = vmatprep.subr.bf16.mxu1 %v2430_v8 }
 0x50d   :  { %1674 = vmatpush1.bf16.msra.mxu0 %v2425_v9  ;;  %1715 = vmatpush1.bf16.msra.mxu1 %v2428_v10 }
 0x50e   :  { %1675 = vmatprep.subr.bf16.mxu0 %v2433_v11  ;;  %1716 = vmatprep.subr.bf16.mxu1 %v2436_v2 }
 0x511   :  { %1676 = vmatpush1.bf16.msra.mxu0 %v2431_v12  ;;  %1717 = vmatpush1.bf16.msra.mxu1 %v2434_v13 }
 0x512   :  { %1677 = vmatprep.subr.bf16.mxu0 %v2439_v14  ;;  %1718 = vmatprep.subr.bf16.mxu1 %v2442_v15 }
 0x515   :  { %1678 = vmatpush1.bf16.msra.mxu0 %v2437_v16  ;;  %1719 = vmatpush1.bf16.msra.mxu1 %v2440_v17 }
 0x516   :  { %1679 = vmatprep.subr.bf16.mxu0 %v2445_v18  ;;  %1720 = vmatprep.subr.bf16.mxu1 %v2448_v19  ;;  %v2498_v18 = vld [vmem:[%s3003_s12 + $0x38] sm:$0xff]  }
 0x519   :  { %1680 = vmatpush1.bf16.msra.mxu0 %v2443_v20  ;;  %1721 = vmatpush1.bf16.msra.mxu1 %v2446_v21  ;;  %v2499_v21 = vld [vmem:[%s3003_s12 + $0x70] sm:$0xff]  }
 0x51a   :  { %1681 = vmatprep.subr.bf16.mxu0 %v2451_v22  ;;  %1722 = vmatprep.subr.bf16.mxu1 %v2454_v23  ;;  %v2500_v22 = vld [vmem:[%s3003_s12 + $0x30] sm:$0xff]   ;;  %v2501_v23 = vld [vmem:[%s3003_s12 + $0x68] sm:$0xff]  }
 0x51d   :  { %1682 = vmatpush2.bf16.msra.mxu0 %v2449_v24  ;;  %1723 = vmatpush2.bf16.msra.mxu1 %v2452_v25  ;;  %v2502_v24 = vld [vmem:[%s3003_s12 + $0x28] sm:$0xff]   ;;  %v2503_v25 = vld [vmem:[%s3003_s12 + $0x60] sm:$0xff]  }
 0x51e   :  { %1683 = vmatprep.subr.bf16.mxu0 %v2457_v26  ;;  %1724 = vmatprep.subr.bf16.mxu1 %v2460_v27  ;;  %v2504_v26 = vld [vmem:[%s3003_s12 + $0x20] sm:$0xff]   ;;  %v2505_v27 = vld [vmem:[%s3003_s12 + $0x58] sm:$0xff]  }
 0x521   :  { %1684 = vmatpush2.bf16.msra.mxu0 %v2455_v28  ;;  %1725 = vmatpush2.bf16.msra.mxu1 %v2458_v29  ;;  %v2506_v28 = vld [vmem:[%s3003_s12 + $0x18] sm:$0xff]   ;;  %v2507_v29 = vld [vmem:[%s3003_s12 + $0x50] sm:$0xff]  }
 0x522   :  { %1685 = vmatprep.subr.bf16.mxu0 %v2463_v30  ;;  %1726 = vmatprep.subr.bf16.mxu1 %v2466_v31  ;;  %v2508_v30 = vld [vmem:[%s3003_s12 + $0x10] sm:$0xff]   ;;  %v2509_v31 = vld [vmem:[%s3003_s12 + $0x48] sm:$0xff]  }
 0x525   :  { %1686 = vmatpush2.bf16.msra.mxu0 %v2461_v32  ;;  %1727 = vmatpush2.bf16.msra.mxu1 %v2464_v33  ;;  %v2510_v32 = vld [vmem:[%s3003_s12 + $0x8] sm:$0xff]   ;;  %v2511_v33 = vld [vmem:[%s3003_s12 + $0x40] sm:$0xff]  }
 0x526   :  { %1687 = vmatprep.subr.bf16.mxu0 %v2469_v34  ;;  %1728 = vmatprep.subr.bf16.mxu1 %v2472_v35  ;;  %v2512_v34 = vld [vmem:[%s3003_s12] sm:$0xff]   ;;  %v1333_v35 = vld [vmem:[%s3004_s13 + $0xd] sm:$0x3] }
 0x529   :  { %1688 = vmatpush2.bf16.msra.mxu0 %v2467_v36  ;;  %1729 = vmatpush2.bf16.msra.mxu1 %v2470_v37  ;;  %v1338_v36 = vrot.slane %v1333_v35, %v2906_v49  ;;  %v1342_v37 = vrot.slane %v1333_v35, %v2912_v52  ;;  %v2122_v52 = vld [vmem:[%s3004_s13 + $0xf] ss:$0 sm:$0xff] }
 0x52a   :  { %1689 = vmatprep.subr.bf16.mxu0 %v2475_v38  ;;  %1730 = vmatprep.subr.bf16.mxu1 %v2478_v39 }
 0x52d   :  { %1690 = vmatpush2.bf16.msra.mxu0 %v2473_v40  ;;  %1731 = vmatpush2.bf16.msra.mxu1 %v2476_v41 }
 0x52e   :  { %1691 = vmatprep.subr.bf16.mxu0 %v2481_v42  ;;  %1732 = vmatprep.subr.bf16.mxu1 %v2484_v43 }
 0x531   :  { %1692 = vmatpush2.bf16.msra.mxu0 %v2479_v44  ;;  %1733 = vmatpush2.bf16.msra.mxu1 %v2482_v45 }
 0x532   :  { %1693 = vmatprep.subr.bf16.mxu0 %v2487_v46  ;;  %1734 = vmatprep.subr.bf16.mxu1 %v2490_v47 }
 0x535   :  { %1694 = vmatpush2.bf16.msra.mxu0 %v2485_v50  ;;  %1735 = vmatpush2.bf16.msra.mxu1 %v2488_v51 }
 0x536   :  { %1695 = vmatprep.subr.bf16.mxu0 %v2493_v53  ;;  %1736 = vmatprep.subr.bf16.mxu1 %v2496_v54 }
 0x539   :  { %1696 = vmatpush2.bf16.msra.mxu0 %v2491_v55  ;;  %1737 = vmatpush2.bf16.msra.mxu1 %v2494_v56 }
 0x53a   :  { %2163 = vmatprep.subr.bf16.mxu0 %v2497_v57 }
 0x5bc   :  { %v1213_v1 = vpop.f32.mrf.mxu0  ;;  %v1254_v3 = vpop.f32.mrf.mxu1 }
 0x5bd   :  { %v1214_v4 = vadd.f32 %v1213_v1, %v842_v61  ;;  %v1255_v5 = vadd.f32 %v1254_v3, %v850_v62 }
 0x5be   :  { %v1215_v6 = vpop.f32.mrf.mxu0  ;;  %v1256_v7 = vpop.f32.mrf.mxu1 }
 0x5bf   :  { %v1216_v8 = vadd.f32 %v1215_v6, %v846_v63  ;;  %v1257_v9 = vadd.f32 %v1256_v7, %v854_v0  ;;  %v1261_v10 = vmax.f32 %v1214_v4, 0.0  ;;  %v1263_v11 = vmax.f32 %v1255_v5, 0.0 }
 0x5c0   :  { %v1217_v2 = vpop.f32.mrf.mxu0  ;;  %v1258_v12 = vpop.f32.mrf.mxu1 }
 0x5c1   :  { %v1262_v13 = vmax.f32 %v1216_v8, 0.0  ;;  %v1264_v48 = vmax.f32 %v1257_v9, 0.0  ;;  %v1265_v19 = vpack.c.bf16 %v1261_v10, %v1261_v10  ;;  %v1267_v20 = vpack.c.bf16 %v1263_v11, %v1263_v11 }
 0x5c2   :  { %v1218_v14 = vpop.f32.mrf.mxu0  ;;  %v1259_v15 = vpop.f32.mrf.mxu1 }
 0x5c3   :  { %v1266_v16 = vpack.c.bf16 %v1262_v13, %v1262_v13  ;;  %v1268_v17 = vpack.c.bf16 %v1264_v48, %v1264_v48 }
 0x5c5   :  { %1697 = vmatprep.mubr.bf16.mxu0 %v1266_v16  ;;  %1738 = vmatprep.mubr.bf16.mxu1 %v1268_v17 }
 0x5c6   :  { %1698 = vmatmul.mubr.bf16.vlgmr.msra.gmra.mxu0 %v1265_v19  ;;  %1739 = vmatmul.mubr.bf16.vlgmr.msra.gmra.mxu1 %v1267_v20 }
 0x5c7   :  { %2164 = vmatpush3.bf16.msra.mxu0 %v2498_v18 }
 0x5c8   :  { %2165 = vmatprep.subr.bf16.mxu0 %v2499_v21 }
 0x5cb   :  { %2166 = vmatpush3.bf16.msra.mxu0 %v2500_v22 }
 0x5cc   :  { %2167 = vmatprep.subr.bf16.mxu0 %v2501_v23 }
 0x5cf   :  { %2168 = vmatpush3.bf16.msra.mxu0 %v2502_v24 }
 0x5d0   :  { %2169 = vmatprep.subr.bf16.mxu0 %v2503_v25 }
 0x5d3   :  { %2170 = vmatpush3.bf16.msra.mxu0 %v2504_v26 }
 0x5d4   :  { %2171 = vmatprep.subr.bf16.mxu0 %v2505_v27 }
 0x5d7   :  { %2172 = vmatpush3.bf16.msra.mxu0 %v2506_v28 }
 0x5d8   :  { %2173 = vmatprep.subr.bf16.mxu0 %v2507_v29 }
 0x5db   :  { %2174 = vmatpush3.bf16.msra.mxu0 %v2508_v30 }
 0x5dc   :  { %2175 = vmatprep.subr.bf16.mxu0 %v2509_v31 }
 0x5df   :  { %2176 = vmatpush3.bf16.msra.mxu0 %v2510_v32 }
 0x5e0   :  { %2177 = vmatprep.subr.bf16.mxu0 %v2511_v33 }
 0x5e3   :  { %2178 = vmatpush3.bf16.msra.mxu0 %v2512_v34 }
 0x686   :  { %v1699_v38 = vpop.f32.mrf.mxu0  ;;  %v1740_v39 = vpop.f32.mrf.mxu1 }
 0x687   :  { %v1700_v40 = vadd.f32 %v1699_v38, %v1338_v36 }
 0x688   :  { %v1701_v41 = vpop.f32.mrf.mxu0  ;;  %v1742_v42 = vpop.f32.mrf.mxu1 }
 0x689   :  { %v1741_v43 = vadd.f32 %v1740_v39, %v1700_v40  ;;  %v1702_v44 = vadd.f32 %v1701_v41, %v1342_v37 }
 0x68a   :  { %v1703_v45 = vpop.f32.mrf.mxu0  ;;  %v1744_v46 = vpop.f32.mrf.mxu1 }
 0x68b   :  { %v1743_v47 = vadd.f32 %v1742_v42, %v1702_v44  ;;  %v1747_v50 = vmax.f32 %v1741_v43, 0.0 }
 0x68c   :  { %v1704_v51 = vpop.f32.mrf.mxu0  ;;  %v1745_v53 = vpop.f32.mrf.mxu1 }
 0x68d   :  { %v1748_v54 = vmax.f32 %v1743_v47, 0.0  ;;  %v1749_v56 = vpack.c.bf16 %v1747_v50, %v1747_v50 }
 0x68f   :  { %v1750_v55 = vpack.c.bf16 %v1748_v54, %v1748_v54 }
 0x691   :  { %1918 = vmatprep.mubr.bf16.mxu0 %v1750_v55 }
 0x692   :  { %1919 = vmatmul.mubr.bf16.vlgmr.msra.gmra.mxu0 %v1749_v56 }
 0x752   :  { %v2179_v49 = vpop.f32.mrf.mxu0 }
 0x754   :  { %v2180_v57 = vpop.f32.mrf.mxu0 }
 0x755   :  { %v2181_v58 = vadd.f32 %v2180_v57, %v2179_v49 }
 0x756   :  { %v2182_v59 = vpop.f32.mrf.mxu0 }
 0x757   :  { %v1921_v60 = vadd.f32 %v2181_v58, %v2122_v52 }
 0x758   :  { %v2183_v61 = vpop.f32.mrf.mxu0 }
 0x759   :  { %1927 = vst.msk [vmem:[#allocation11] sm:$0x3] %vm1926_vm8, %v1921_v60 }
 0x75a   :  { %2624 = shalt.err (!%p2621_p1)
}
 0x75b   :  { %1937 = dma.vmem_to_hbm [thread:$0]  %s1935_s22, 32, %s3005_s14, [#allocation4]  }
 0x75c   :  { %2639 = dma.done.wait [#allocation4], 32  }
 0x75d   :  { %2640 = vsyncadd [#allocation4], 4294967264 }
 0x75e   :  { %1941 = vsyncpa [#allocation3], 1 }
 0x75f   :  { %1942 = vsyncpa [#allocation6], 1 }
 0x760   :  { %1943 = vsyncpa [#allocation9], 1 }
 0x761   :  { %1944 = vsyncpa [#allocation4], 1 }

</bundles_post_ra>
